<compile_context>
chip_gen: v5e
topology: v5e:2x2
jax: 0.10.0
libtpu: 0.0.40
codegen_flags: <defaults>
</compile_context>

<pallas_src>
import jax
import jax.numpy as jnp
from jax import lax
from jax.experimental import pallas as pl
from jax.experimental.pallas import tpu as pltpu


_UNROLL_T = 4       # fully unroll the time loop when T <= this
_MAX_B_TILE = 128   # batch streams per grid step ("parallel" axis -> both TCs on v7x)


def lstm_seq_kernel(x_ref,       # (T, Bt, E)   embedded inputs, compute dtype
                    wx0_ref,     # (E, 4H)      layer-0 input weights (transposed)
                    wxr_ref,     # (Lr, H, 4H)  layers>=1 input weights (transposed)
                    wh_ref,      # (L, H, 4H)   recurrent weights (transposed)
                    b_ref,       # (L, 1, 4H)   fused bias b_ih + b_hh, f32
                    h0_ref,      # (L, Bt, H)   incoming hidden, f32
                    c0_ref,      # (L, Bt, H)   incoming cell,   f32
                    out_ref,     # (T, Bt, H)   per-step last-layer hidden, f32
                    h_out_ref,   # (L, Bt, H)   new hidden (aliases hidden buffer)
                    c_out_ref):  # (L, Bt, H)   new cell   (aliases state buffer)
    T = x_ref.shape[0]
    L, _, H = h0_ref.shape
    cdt = wh_ref.dtype   # matmul operand dtype (bf16 by default, f32 supported)

    def step(x_t, hs, cs):
        """One time step over all L stacked layers. x_t: (Bt, E) in cdt."""
        x = x_t
        new_hs, new_cs = [], []
        for l in range(L):
            # Weights are streamed from VMEM refs inside the loop (no vreg
            # pinning); split x/h matmuls avoid the per-step concat relayout.
            wx = wx0_ref[...] if l == 0 else wxr_ref[l - 1]
            gates = (jnp.dot(x, wx, preferred_element_type=jnp.float32)
                     + jnp.dot(hs[l].astype(cdt), wh_ref[l],
                               preferred_element_type=jnp.float32)
                     + b_ref[l])                                    # (Bt, 4H) f32
            # Full-width activations on the whole gates slab, slice afterwards.
            sig = jax.nn.sigmoid(gates)
            th = jnp.tanh(gates)
            i_g = sig[:, 0 * H:1 * H]
            f_g = sig[:, 1 * H:2 * H]
            g_g = th[:, 2 * H:3 * H]
            o_g = sig[:, 3 * H:4 * H]
            c_new = f_g * cs[l] + i_g * g_g
            h_new = o_g * jnp.tanh(c_new)
            new_cs.append(c_new)
            new_hs.append(h_new)
            x = h_new.astype(cdt)
            # TODO(synk): inter-layer dropout (dropoutProb) not applied -- inference.
        return tuple(new_hs), tuple(new_cs)

    hs = tuple(h0_ref[l] for l in range(L))
    cs = tuple(c0_ref[l] for l in range(L))

    # TODO(synk): for very long T on v5e, stage per-step outputs in VMEM scratch
    # and store one lane-dense slab instead of T narrow (Bt, H) stores.
    if T <= _UNROLL_T:
        for t in range(T):                                  # static, fully unrolled
            hs, cs = step(x_ref[t], hs, cs)
            out_ref[t] = hs[L - 1].astype(out_ref.dtype)
    else:
        def body(t, carry):
            hs_c, cs_c = carry
            hs_n, cs_n = step(x_ref[t], hs_c, cs_c)
            out_ref[t] = hs_n[L - 1].astype(out_ref.dtype)
            return (hs_n, cs_n)
        hs, cs = lax.fori_loop(0, T, body, (hs, cs), unroll=2)

    for l in range(L):
        h_out_ref[l] = hs[l].astype(h_out_ref.dtype)
        c_out_ref[l] = cs[l].astype(c_out_ref.dtype)


def prepare_encoder_params(emb, w_ih, w_hh, b_ih, b_hh, compute_dtype=jnp.bfloat16):
    """One-time prep: transpose to (K, 4H) layout, fuse biases, cast matmul
    operands to the MXU-native compute dtype (bf16 halves weight DMA / VMEM).

    w_ih is a tuple of per-layer (4H, E_l) arrays (E_0 = embeddingSize,
    E_{l>0} = hiddenSize), so embeddingSize != hiddenSize is supported.
    """
    L, fourH, H = w_hh.shape
    wx0 = w_ih[0].T.astype(compute_dtype)                         # (E, 4H)
    if L > 1:
        wxr = jnp.stack([w_ih[l].T for l in range(1, L)])         # (L-1, H, 4H)
    else:
        wxr = jnp.zeros((1, H, fourH), w_hh.dtype)                # unused dummy
    wxr = wxr.astype(compute_dtype)
    wh = jnp.swapaxes(w_hh, 1, 2).astype(compute_dtype)           # (L, H, 4H)
    b = (b_ih + b_hh).reshape(L, 1, fourH).astype(jnp.float32)    # (L, 1, 4H)
    return (emb.astype(compute_dtype), wx0, wxr, wh, b)


def lstm_seq_forward(x_emb, hidden, state, rnn_params):
    """Runs T LSTM steps over L stacked layers and B independent streams in one
    pallas_call.  x_emb: (T, B, E) compute dtype; hidden/state: (L, B, H) f32."""
    wx0, wxr, wh, b = rnn_params
    T, B, E = x_emb.shape
    L, _, H = hidden.shape
    Lr = wxr.shape[0]
    fourH = 4 * H

    if B <= _MAX_B_TILE:
        bt = B
    else:
        assert B % _MAX_B_TILE == 0, "large batches must be a multiple of the B tile"
        bt = _MAX_B_TILE
    grid = (B // bt,)

    isz = lambda a: jnp.dtype(a.dtype).itemsize
    block_bytes = (T * bt * E * isz(x_emb)
                   + E * fourH * isz(wx0)
                   + Lr * H * fourH * isz(wxr)
                   + L * H * fourH * isz(wh)
                   + L * fourH * 4
                   + 4 * L * bt * H * 4        # h0, c0, h_out, c_out (f32)
                   + T * bt * H * 4)           # out (f32)
    # Explicit scoped-VMEM budget (survives v7x's 64 MiB physical VMEM).
    vmem_limit = int(min(64 << 20, max(32 << 20, 2 * block_bytes + (8 << 20))))

    out_shapes = (
        jax.ShapeDtypeStruct((T, B, H), jnp.float32),   # per-step last-layer hidden
        jax.ShapeDtypeStruct((L, B, H), jnp.float32),   # new hidden
        jax.ShapeDtypeStruct((L, B, H), jnp.float32),   # new cell
    )
    return pl.pallas_call(
        lstm_seq_kernel,
        out_shape=out_shapes,
        grid=grid,
        in_specs=[
            pl.BlockSpec((T, bt, E), lambda i: (0, i, 0)),       # x (B-sliced)
            pl.BlockSpec((E, fourH), lambda i: (0, 0)),          # wx0 (resident)
            pl.BlockSpec((Lr, H, fourH), lambda i: (0, 0, 0)),   # wxr (resident)
            pl.BlockSpec((L, H, fourH), lambda i: (0, 0, 0)),    # wh  (resident)
            pl.BlockSpec((L, 1, fourH), lambda i: (0, 0, 0)),    # b   (resident)
            pl.BlockSpec((L, bt, H), lambda i: (0, i, 0)),       # hidden (B-sliced)
            pl.BlockSpec((L, bt, H), lambda i: (0, i, 0)),       # state  (B-sliced)
        ],
        out_specs=(
            pl.BlockSpec((T, bt, H), lambda i: (0, i, 0)),
            pl.BlockSpec((L, bt, H), lambda i: (0, i, 0)),
            pl.BlockSpec((L, bt, H), lambda i: (0, i, 0)),
        ),
        # hidden -> new hidden, state -> new cell.  The in-place carry only
        # materializes when the caller jits with donated hidden/state buffers.
        input_output_aliases={5: 1, 6: 2},
        compiler_params=pltpu.CompilerParams(
            dimension_semantics=("parallel",),   # B-blocks are independent (v7x 2 TCs)
            vmem_limit_bytes=vmem_limit),
    )(x_emb, wx0, wxr, wh, b, hidden, state)


def encoder_forward(token, hidden, state, prepared_params):
    """Module-parity forward: one token (shape (1,)) -> (output (1,1,H), hidden, state)."""
    emb_table, wx0, wxr, wh, b = prepared_params
    x_emb = emb_table[token][:, None, :]   # (1, 1, E): single-row gather, no table DMA
    return lstm_seq_forward(x_emb, hidden, state, (wx0, wxr, wh, b))


def lstm_seq_ref(x_emb, hidden, state, w_ih, w_hh, b_ih, b_hh):
    """Pure-JAX f32 reference in the original PyTorch layout (w_ih is per-layer tuple)."""
    T = x_emb.shape[0]
    L, _, H = hidden.shape
    h = [hidden[l] for l in range(L)]
    c = [state[l] for l in range(L)]
    outs = []
    for t in range(T):
        x = x_emb[t]
        for l in range(L):
            gates = x @ w_ih[l].T + b_ih[l] + h[l] @ w_hh[l].T + b_hh[l]
            i = jax.nn.sigmoid(gates[:, 0 * H:1 * H])
            f = jax.nn.sigmoid(gates[:, 1 * H:2 * H])
            g = jnp.tanh(gates[:, 2 * H:3 * H])
            o = jax.nn.sigmoid(gates[:, 3 * H:4 * H])
            c[l] = f * c[l] + i * g
            h[l] = o * jnp.tanh(c[l])
            x = h[l]
        outs.append(x)
    return jnp.stack(outs), jnp.stack(h), jnp.stack(c)


if __name__ == "__main__":
    inputSize = 64        # vocab
    embeddingSize = 48    # deliberately != hiddenSize (layout no longer requires E == H)
    hiddenSize = 32
    n_layers = 2
    # dropoutProb -> inter-layer dropout not applied (inference semantics)

    key = jax.random.PRNGKey(0)
    keys = jax.random.split(key, 8)
    k = 1.0 / (hiddenSize ** 0.5)

    emb = jax.random.normal(keys[0], (inputSize, embeddingSize), jnp.float32)
    w_ih = tuple(
        jax.random.uniform(jax.random.fold_in(keys[1], l),
                           (4 * hiddenSize, embeddingSize if l == 0 else hiddenSize),
                           jnp.float32, -k, k)
        for l in range(n_layers))
    w_hh = jax.random.uniform(keys[2], (n_layers, 4 * hiddenSize, hiddenSize),
                              jnp.float32, -k, k)
    b_ih = jax.random.uniform(keys[3], (n_layers, 4 * hiddenSize), jnp.float32, -k, k)
    b_hh = jax.random.uniform(keys[4], (n_layers, 4 * hiddenSize), jnp.float32, -k, k)

    prepared_f32 = prepare_encoder_params(emb, w_ih, w_hh, b_ih, b_hh, jnp.float32)
    prepared_bf16 = prepare_encoder_params(emb, w_ih, w_hh, b_ih, b_hh, jnp.bfloat16)

    # 1) Module-parity single-token step (exactly Encoder.forward): T=1, B=1, f32.
    hidden1 = jnp.zeros((n_layers, 1, hiddenSize), jnp.float32)   # initHidden()
    state1 = jnp.zeros_like(hidden1)
    token = jnp.array([5], dtype=jnp.int32)
    out, h_new, c_new = jax.jit(encoder_forward)(token, hidden1, state1, prepared_f32)
    jax.block_until_ready((out, h_new, c_new))
    out_r, h_r, c_r = lstm_seq_ref(emb[token][:, None, :], hidden1, state1,
                                   w_ih, w_hh, b_ih, b_hh)
    assert out.shape == (1, 1, hiddenSize)
    assert jnp.allclose(out, out_r, atol=5e-3)      # tol covers MXU f32 pass rounding
    assert jnp.allclose(h_new, h_r, atol=5e-3)
    assert jnp.allclose(c_new, c_r, atol=5e-3)

    # 2) Batched streams (B fills MXU/vreg sublanes) + in-kernel fori time loop, bf16.
    B, T = 8, 8
    tokens = jax.random.randint(keys[5], (T, B), 0, inputSize, jnp.int32)
    hiddenB = jnp.zeros((n_layers, B, hiddenSize), jnp.float32)
    stateB = jnp.zeros_like(hiddenB)
    x_bf16 = prepared_bf16[0][tokens]                             # (T, B, E) bf16
    out_s, h_s, c_s = jax.jit(lstm_seq_forward)(x_bf16, hiddenB, stateB,
                                                prepared_bf16[1:])
    jax.block_until_ready((out_s, h_s, c_s))
    out_sr, h_sr, c_sr = lstm_seq_ref(emb[tokens], hiddenB, stateB,
                                      w_ih, w_hh, b_ih, b_hh)
    assert jnp.allclose(out_s, out_sr, atol=5e-2)    # bf16 weights/inputs tolerance
    assert jnp.allclose(h_s, h_sr, atol=5e-2)
    assert jnp.allclose(c_s, c_sr, atol=5e-2)

    # 3) Jitted decode loop with a donated carry: the intended fast path for
    #    input_output_aliases (in-place hidden/state update, no realloc per token).
    step_fn = jax.jit(encoder_forward, donate_argnums=(1, 2))
    h_d = jnp.zeros((n_layers, 1, hiddenSize), jnp.float32)
    c_d = jnp.zeros_like(h_d)
    decode_tokens = tokens[:, 0]
    outs = []
    for t in range(T):
        out_t, h_d, c_d = step_fn(decode_tokens[t:t + 1], h_d, c_d, prepared_bf16)
        outs.append(out_t)
    out_decode = jnp.concatenate(outs, axis=0)                    # (T, 1, H)
    jax.block_until_ready((out_decode, h_d, c_d))
    assert jnp.allclose(out_decode[:, 0], out_sr[:, 0], atol=5e-2)
    assert jnp.allclose(h_d[:, 0], h_sr[:, 0], atol=5e-2)
    assert jnp.allclose(c_d[:, 0], c_sr[:, 0], atol=5e-2)

    print("KERNEL_OK")
</pallas_src>

<mosaic_0001>
module attributes {stable_mosaic.version = 11 : i64} {
  func.func @lstm_seq_kernel(%arg0: i32, %arg1: memref<1x1x48xf32, #tpu.memory_space<vmem>>, %arg2: memref<48x128xf32, #tpu.memory_space<vmem>>, %arg3: memref<1x32x128xf32, #tpu.memory_space<vmem>>, %arg4: memref<2x32x128xf32, #tpu.memory_space<vmem>>, %arg5: memref<2x1x128xf32, #tpu.memory_space<vmem>>, %arg6: memref<2x1x32xf32, #tpu.memory_space<vmem>>, %arg7: memref<2x1x32xf32, #tpu.memory_space<vmem>>, %arg8: memref<1x1x32xf32, #tpu.memory_space<vmem>>, %arg9: memref<2x1x32xf32, #tpu.memory_space<vmem>>, %arg10: memref<2x1x32xf32, #tpu.memory_space<vmem>>) attributes {dimension_semantics = [#tpu.dimension_semantics<parallel>], iteration_bounds = array<i64: 1>, scalar_prefetch = 0 : i64, scratch_operands = 0 : i64, tpu.core_type = #tpu.core_type<tc>, window_params = [{transform_indices = @transform_0, window_bounds = array<i64: 1, 1, 48>}, {pipeline_mode = #tpu.pipeline_mode<synchronous>, transform_indices = @transform_1, window_bounds = array<i64: 48, 128>}, {pipeline_mode = #tpu.pipeline_mode<synchronous>, transform_indices = @transform_2, window_bounds = array<i64: 1, 32, 128>}, {pipeline_mode = #tpu.pipeline_mode<synchronous>, transform_indices = @transform_3, window_bounds = array<i64: 2, 32, 128>}, {pipeline_mode = #tpu.pipeline_mode<synchronous>, transform_indices = @transform_4, window_bounds = array<i64: 2, 1, 128>}, {transform_indices = @transform_5, window_bounds = array<i64: 2, 1, 32>}, {transform_indices = @transform_6, window_bounds = array<i64: 2, 1, 32>}, {transform_indices = @transform_7, window_bounds = array<i64: 1, 1, 32>}, {transform_indices = @transform_8, window_bounds = array<i64: 2, 1, 32>}, {transform_indices = @transform_9, window_bounds = array<i64: 2, 1, 32>}]} {
    %c0 = arith.constant 0 : index
    %c0_0 = arith.constant 0 : index
    %c0_1 = arith.constant 0 : index
    %0 = vector.load %arg6[%c0, %c0_0, %c0_1] : memref<2x1x32xf32, #tpu.memory_space<vmem>>, vector<1x1x32xf32>
    %1 = vector.shape_cast %0 : vector<1x1x32xf32> to vector<1x32xf32>
    %c1 = arith.constant 1 : index
    %c0_2 = arith.constant 0 : index
    %c0_3 = arith.constant 0 : index
    %2 = vector.load %arg6[%c1, %c0_2, %c0_3] : memref<2x1x32xf32, #tpu.memory_space<vmem>>, vector<1x1x32xf32>
    %3 = vector.shape_cast %2 : vector<1x1x32xf32> to vector<1x32xf32>
    %c0_4 = arith.constant 0 : index
    %c0_5 = arith.constant 0 : index
    %c0_6 = arith.constant 0 : index
    %4 = vector.load %arg7[%c0_4, %c0_5, %c0_6] : memref<2x1x32xf32, #tpu.memory_space<vmem>>, vector<1x1x32xf32>
    %5 = vector.shape_cast %4 : vector<1x1x32xf32> to vector<1x32xf32>
    %c1_7 = arith.constant 1 : index
    %c0_8 = arith.constant 0 : index
    %c0_9 = arith.constant 0 : index
    %6 = vector.load %arg7[%c1_7, %c0_8, %c0_9] : memref<2x1x32xf32, #tpu.memory_space<vmem>>, vector<1x1x32xf32>
    %7 = vector.shape_cast %6 : vector<1x1x32xf32> to vector<1x32xf32>
    %c0_10 = arith.constant 0 : index
    %c0_11 = arith.constant 0 : index
    %c0_12 = arith.constant 0 : index
    %8 = vector.load %arg1[%c0_10, %c0_11, %c0_12] : memref<1x1x48xf32, #tpu.memory_space<vmem>>, vector<1x1x48xf32>
    %9 = vector.shape_cast %8 : vector<1x1x48xf32> to vector<1x48xf32>
    %c0_13 = arith.constant 0 : index
    %c0_14 = arith.constant 0 : index
    %10 = vector.load %arg2[%c0_13, %c0_14] : memref<48x128xf32, #tpu.memory_space<vmem>>, vector<48x128xf32>
    %cst = arith.constant dense<0.000000e+00> : vector<1x128xf32>
    %11 = tpu.matmul %9, %10, %cst {dimension_numbers = #tpu.dot_dimension_numbers<[1], [0], [0], [1], [0, 0, 1, 1], [], []>} : vector<1x48xf32>, vector<48x128xf32>, vector<1x128xf32> -> vector<1x128xf32>
    %c0_15 = arith.constant 0 : index
    %c0_16 = arith.constant 0 : index
    %c0_17 = arith.constant 0 : index
    %12 = vector.load %arg4[%c0_15, %c0_16, %c0_17] : memref<2x32x128xf32, #tpu.memory_space<vmem>>, vector<1x32x128xf32>
    %13 = vector.shape_cast %12 : vector<1x32x128xf32> to vector<32x128xf32>
    %cst_18 = arith.constant dense<0.000000e+00> : vector<1x128xf32>
    %14 = tpu.matmul %1, %13, %cst_18 {dimension_numbers = #tpu.dot_dimension_numbers<[1], [0], [0], [1], [0, 0, 1, 1], [], []>} : vector<1x32xf32>, vector<32x128xf32>, vector<1x128xf32> -> vector<1x128xf32>
    %15 = arith.addf %11, %14 : vector<1x128xf32>
    %c0_19 = arith.constant 0 : index
    %c0_20 = arith.constant 0 : index
    %c0_21 = arith.constant 0 : index
    %16 = vector.load %arg5[%c0_19, %c0_20, %c0_21] : memref<2x1x128xf32, #tpu.memory_space<vmem>>, vector<1x1x128xf32>
    %17 = vector.shape_cast %16 : vector<1x1x128xf32> to vector<1x128xf32>
    %18 = arith.addf %15, %17 : vector<1x128xf32>
    %19 = arith.negf %18 : vector<1x128xf32>
    %20 = math.exp %19 : vector<1x128xf32>
    %cst_22 = arith.constant 1.000000e+00 : f32
    %21 = vector.broadcast %cst_22 : f32 to vector<1x128xf32>
    %22 = arith.addf %21, %20 : vector<1x128xf32>
    %23 = arith.divf %21, %22 : vector<1x128xf32>
    %24 = math.tanh %18 : vector<1x128xf32>
    %25 = vector.extract_strided_slice %23 {offsets = [0, 0], sizes = [1, 32], strides = [1, 1]} : vector<1x128xf32> to vector<1x32xf32>
    %26 = vector.extract_strided_slice %23 {offsets = [0, 32], sizes = [1, 32], strides = [1, 1]} : vector<1x128xf32> to vector<1x32xf32>
    %27 = vector.extract_strided_slice %24 {offsets = [0, 64], sizes = [1, 32], strides = [1, 1]} : vector<1x128xf32> to vector<1x32xf32>
    %28 = vector.extract_strided_slice %23 {offsets = [0, 96], sizes = [1, 32], strides = [1, 1]} : vector<1x128xf32> to vector<1x32xf32>
    %29 = arith.mulf %26, %5 : vector<1x32xf32>
    %30 = arith.mulf %25, %27 : vector<1x32xf32>
    %31 = arith.addf %29, %30 : vector<1x32xf32>
    %32 = math.tanh %31 : vector<1x32xf32>
    %33 = arith.mulf %28, %32 : vector<1x32xf32>
    %c0_23 = arith.constant 0 : index
    %c0_24 = arith.constant 0 : index
    %c0_25 = arith.constant 0 : index
    %34 = vector.load %arg3[%c0_23, %c0_24, %c0_25] : memref<1x32x128xf32, #tpu.memory_space<vmem>>, vector<1x32x128xf32>
    %35 = vector.shape_cast %34 : vector<1x32x128xf32> to vector<32x128xf32>
    %cst_26 = arith.constant dense<0.000000e+00> : vector<1x128xf32>
    %36 = tpu.matmul %33, %35, %cst_26 {dimension_numbers = #tpu.dot_dimension_numbers<[1], [0], [0], [1], [0, 0, 1, 1], [], []>} : vector<1x32xf32>, vector<32x128xf32>, vector<1x128xf32> -> vector<1x128xf32>
    %c1_27 = arith.constant 1 : index
    %c0_28 = arith.constant 0 : index
    %c0_29 = arith.constant 0 : index
    %37 = vector.load %arg4[%c1_27, %c0_28, %c0_29] : memref<2x32x128xf32, #tpu.memory_space<vmem>>, vector<1x32x128xf32>
    %38 = vector.shape_cast %37 : vector<1x32x128xf32> to vector<32x128xf32>
    %cst_30 = arith.constant dense<0.000000e+00> : vector<1x128xf32>
    %39 = tpu.matmul %3, %38, %cst_30 {dimension_numbers = #tpu.dot_dimension_numbers<[1], [0], [0], [1], [0, 0, 1, 1], [], []>} : vector<1x32xf32>, vector<32x128xf32>, vector<1x128xf32> -> vector<1x128xf32>
    %40 = arith.addf %36, %39 : vector<1x128xf32>
    %c1_31 = arith.constant 1 : index
    %c0_32 = arith.constant 0 : index
    %c0_33 = arith.constant 0 : index
    %41 = vector.load %arg5[%c1_31, %c0_32, %c0_33] : memref<2x1x128xf32, #tpu.memory_space<vmem>>, vector<1x1x128xf32>
    %42 = vector.shape_cast %41 : vector<1x1x128xf32> to vector<1x128xf32>
    %43 = arith.addf %40, %42 : vector<1x128xf32>
    %44 = arith.negf %43 : vector<1x128xf32>
    %45 = math.exp %44 : vector<1x128xf32>
    %cst_34 = arith.constant 1.000000e+00 : f32
    %46 = vector.broadcast %cst_34 : f32 to vector<1x128xf32>
    %47 = arith.addf %46, %45 : vector<1x128xf32>
    %48 = arith.divf %46, %47 : vector<1x128xf32>
    %49 = math.tanh %43 : vector<1x128xf32>
    %50 = vector.extract_strided_slice %48 {offsets = [0, 0], sizes = [1, 32], strides = [1, 1]} : vector<1x128xf32> to vector<1x32xf32>
    %51 = vector.extract_strided_slice %48 {offsets = [0, 32], sizes = [1, 32], strides = [1, 1]} : vector<1x128xf32> to vector<1x32xf32>
    %52 = vector.extract_strided_slice %49 {offsets = [0, 64], sizes = [1, 32], strides = [1, 1]} : vector<1x128xf32> to vector<1x32xf32>
    %53 = vector.extract_strided_slice %48 {offsets = [0, 96], sizes = [1, 32], strides = [1, 1]} : vector<1x128xf32> to vector<1x32xf32>
    %54 = arith.mulf %51, %7 : vector<1x32xf32>
    %55 = arith.mulf %50, %52 : vector<1x32xf32>
    %56 = arith.addf %54, %55 : vector<1x32xf32>
    %57 = math.tanh %56 : vector<1x32xf32>
    %58 = arith.mulf %53, %57 : vector<1x32xf32>
    %c0_35 = arith.constant 0 : index
    %c0_36 = arith.constant 0 : index
    %c0_37 = arith.constant 0 : index
    %59 = vector.load %arg8[%c0_35, %c0_36, %c0_37] : memref<1x1x32xf32, #tpu.memory_space<vmem>>, vector<1x1x32xf32>
    %60 = vector.shape_cast %59 : vector<1x1x32xf32> to vector<1x32xf32>
    %61 = vector.shape_cast %58 : vector<1x32xf32> to vector<1x1x32xf32>
    tpu.vector_store %arg8[%c0_35, %c0_36, %c0_37], %61 {strides = array<i32>} : memref<1x1x32xf32, #tpu.memory_space<vmem>>, vector<1x1x32xf32>,
    %c0_38 = arith.constant 0 : index
    %c0_39 = arith.constant 0 : index
    %c0_40 = arith.constant 0 : index
    %62 = vector.load %arg9[%c0_38, %c0_39, %c0_40] : memref<2x1x32xf32, #tpu.memory_space<vmem>>, vector<1x1x32xf32>
    %63 = vector.shape_cast %62 : vector<1x1x32xf32> to vector<1x32xf32>
    %64 = vector.shape_cast %33 : vector<1x32xf32> to vector<1x1x32xf32>
    tpu.vector_store %arg9[%c0_38, %c0_39, %c0_40], %64 {strides = array<i32>} : memref<2x1x32xf32, #tpu.memory_space<vmem>>, vector<1x1x32xf32>,
    %c0_41 = arith.constant 0 : index
    %c0_42 = arith.constant 0 : index
    %c0_43 = arith.constant 0 : index
    %65 = vector.load %arg10[%c0_41, %c0_42, %c0_43] : memref<2x1x32xf32, #tpu.memory_space<vmem>>, vector<1x1x32xf32>
    %66 = vector.shape_cast %65 : vector<1x1x32xf32> to vector<1x32xf32>
    %67 = vector.shape_cast %31 : vector<1x32xf32> to vector<1x1x32xf32>
    tpu.vector_store %arg10[%c0_41, %c0_42, %c0_43], %67 {strides = array<i32>} : memref<2x1x32xf32, #tpu.memory_space<vmem>>, vector<1x1x32xf32>,
    %c1_44 = arith.constant 1 : index
    %c0_45 = arith.constant 0 : index
    %c0_46 = arith.constant 0 : index
    %68 = vector.load %arg9[%c1_44, %c0_45, %c0_46] : memref<2x1x32xf32, #tpu.memory_space<vmem>>, vector<1x1x32xf32>
    %69 = vector.shape_cast %68 : vector<1x1x32xf32> to vector<1x32xf32>
    %70 = vector.shape_cast %58 : vector<1x32xf32> to vector<1x1x32xf32>
    tpu.vector_store %arg9[%c1_44, %c0_45, %c0_46], %70 {strides = array<i32>} : memref<2x1x32xf32, #tpu.memory_space<vmem>>, vector<1x1x32xf32>,
    %c1_47 = arith.constant 1 : index
    %c0_48 = arith.constant 0 : index
    %c0_49 = arith.constant 0 : index
    %71 = vector.load %arg10[%c1_47, %c0_48, %c0_49] : memref<2x1x32xf32, #tpu.memory_space<vmem>>, vector<1x1x32xf32>
    %72 = vector.shape_cast %71 : vector<1x1x32xf32> to vector<1x32xf32>
    %73 = vector.shape_cast %56 : vector<1x32xf32> to vector<1x1x32xf32>
    tpu.vector_store %arg10[%c1_47, %c0_48, %c0_49], %73 {strides = array<i32>} : memref<2x1x32xf32, #tpu.memory_space<vmem>>, vector<1x1x32xf32>,
    return
  }
  func.func @transform_0(%arg0: i32) -> (i32, i32, i32) {
    %c0_i32 = arith.constant 0 : i32
    %c0_i32_0 = arith.constant 0 : i32
    %c0_i32_1 = arith.constant 0 : i32
    return %c0_i32, %arg0, %c0_i32_0 : i32, i32, i32
  }
  func.func @transform_1(%arg0: i32) -> (i32, i32) {
    %c0_i32 = arith.constant 0 : i32
    %c0_i32_0 = arith.constant 0 : i32
    %c0_i32_1 = arith.constant 0 : i32
    return %c0_i32, %c0_i32_0 : i32, i32
  }
  func.func @transform_2(%arg0: i32) -> (i32, i32, i32) {
    %c0_i32 = arith.constant 0 : i32
    %c0_i32_0 = arith.constant 0 : i32
    %c0_i32_1 = arith.constant 0 : i32
    %c0_i32_2 = arith.constant 0 : i32
    return %c0_i32, %c0_i32_0, %c0_i32_1 : i32, i32, i32
  }
  func.func @transform_3(%arg0: i32) -> (i32, i32, i32) {
    %c0_i32 = arith.constant 0 : i32
    %c0_i32_0 = arith.constant 0 : i32
    %c0_i32_1 = arith.constant 0 : i32
    %c0_i32_2 = arith.constant 0 : i32
    return %c0_i32, %c0_i32_0, %c0_i32_1 : i32, i32, i32
  }
  func.func @transform_4(%arg0: i32) -> (i32, i32, i32) {
    %c0_i32 = arith.constant 0 : i32
    %c0_i32_0 = arith.constant 0 : i32
    %c0_i32_1 = arith.constant 0 : i32
    %c0_i32_2 = arith.constant 0 : i32
    return %c0_i32, %c0_i32_0, %c0_i32_1 : i32, i32, i32
  }
  func.func @transform_5(%arg0: i32) -> (i32, i32, i32) {
    %c0_i32 = arith.constant 0 : i32
    %c0_i32_0 = arith.constant 0 : i32
    %c0_i32_1 = arith.constant 0 : i32
    return %c0_i32, %arg0, %c0_i32_0 : i32, i32, i32
  }
  func.func @transform_6(%arg0: i32) -> (i32, i32, i32) {
    %c0_i32 = arith.constant 0 : i32
    %c0_i32_0 = arith.constant 0 : i32
    %c0_i32_1 = arith.constant 0 : i32
    return %c0_i32, %arg0, %c0_i32_0 : i32, i32, i32
  }
  func.func @transform_7(%arg0: i32) -> (i32, i32, i32) {
    %c0_i32 = arith.constant 0 : i32
    %c0_i32_0 = arith.constant 0 : i32
    %c0_i32_1 = arith.constant 0 : i32
    return %c0_i32, %arg0, %c0_i32_0 : i32, i32, i32
  }
  func.func @transform_8(%arg0: i32) -> (i32, i32, i32) {
    %c0_i32 = arith.constant 0 : i32
    %c0_i32_0 = arith.constant 0 : i32
    %c0_i32_1 = arith.constant 0 : i32
    return %c0_i32, %arg0, %c0_i32_0 : i32, i32, i32
  }
  func.func @transform_9(%arg0: i32) -> (i32, i32, i32) {
    %c0_i32 = arith.constant 0 : i32
    %c0_i32_0 = arith.constant 0 : i32
    %c0_i32_1 = arith.constant 0 : i32
    return %c0_i32, %arg0, %c0_i32_0 : i32, i32, i32
  }
}

</mosaic_0001>

<bundles_post_ra>
// kernel: encoder_forward.1
= control target key start
LH: loop header
LB: loop body
LE: loop exit
PB: predicated region body
PF: predicated region fallthrough
CT: control target
= control target key end

     0   :  { %15 = vsyncpa [#allocation3], 0  ;;  %s749_s0 = inlined_call_operand.vmem [shape: f32[1,1,48], index: 0, kind: input, shape index: {}]   ;;  %s750_s1 = inlined_call_operand.hbm [shape: f32[48,128], index: 1, kind: input, shape index: {}]   ;;  %s751_s2 = inlined_call_operand.hbm [shape: f32[1,32,128], index: 2, kind: input, shape index: {}]   ;;  %s752_s3 = inlined_call_operand.vmem [shape: f32[2,32,128], index: 3, kind: input, shape index: {}]   ;;  %s753_s4 = inlined_call_operand.vmem [shape: f32[2,1,128], index: 4, kind: input, shape index: {}]   ;;  %s754_s5 = inlined_call_operand.hbm [shape: f32[2,1,32], index: 5, kind: input, shape index: {}, may-alias: {5,8}]   ;;  %s755_s6 = inlined_call_operand.hbm [shape: f32[2,1,32], index: 6, kind: input, shape index: {}, may-alias: {6,9}]   ;;  %s756_s7 = inlined_call_operand.hbm [shape: f32[1,1,32], index: 7, kind: output, shape index: {0}]   ;;  %s757_s8 = inlined_call_operand.hbm [shape: f32[2,1,32], index: 8, kind: output, shape index: {1}, may-alias: {5,8}]   ;;  %s758_s9 = inlined_call_operand.hbm [shape: f32[2,1,32], index: 9, kind: output, shape index: {2}, may-alias: {6,9}]  }
   0x1   :  { %16 = vsyncpa [#allocation6], 0 }
   0x2   :  { %17 = vsyncpa [#allocation9], 0 }
   0x3   :  { %18 = vsyncpa [#allocation4], 0 }
   0x4   :  { %19 = vsyncpa [#allocation12], 0  ;;  %s39_s11 = sshll.u32 %s751_s2, 4  ;;  %s601_s12 = smov [#allocation5]   ;;  %s40_s11 = int_to_ptr.hbm [resolvable:$true] %s39_s11 }
   0x5   :  { %s41_s13 = sshll.u32 %s601_s12, 4  ;;  %s26_s16 = sshll.u32 %s750_s1, 4  ;;  %s42_s13 = int_to_ptr.vmem [resolvable:$true] %s41_s13  ;;  %s27_s16 = int_to_ptr.hbm [resolvable:$true] %s26_s16 }
   0x6   :  { %s602_s17 = smov 128   ;;  %s603_s18 = smov 8  }
   0x7   :  { %47 = dma.hbm_to_vmem [thread:$0]  %s40_s11, 512, %s42_s13, [#allocation6], %s602_s17, %s602_s17, %s603_s18  }
   0x8   :  { %s604_s19 = smov [#allocation2]   ;;  %s56_s23 = sshll.u32 %s754_s5, 4  ;;  %s57_s23 = int_to_ptr.hbm [resolvable:$true] %s56_s23 }
   0x9   :  { %s28_s20 = sshll.u32 %s604_s19, 4  ;;  %s605_s2 = smov [#allocation7]   ;;  %s29_s20 = int_to_ptr.vmem [resolvable:$true] %s28_s20 }
   0xa   :  { %34 = dma.hbm_to_vmem [thread:$0]  %s27_s16, 768, %s29_s20, [#allocation3], %s602_s17, %s602_s17, %s603_s18  }
   0xb   :  { %s58_s24 = sshll.u32 %s605_s2, 4  ;;  %s69_s1 = sshll.u32 %s755_s6, 4  ;;  %s59_s24 = int_to_ptr.vmem [resolvable:$true] %s58_s24  ;;  %s70_s1 = int_to_ptr.hbm [resolvable:$true] %s69_s1 }
   0xc   :  { %s606_s27 = smov 16   ;;  %s607_s28 = smov 1  }
   0xd   :  { %64 = dma.hbm_to_vmem [thread:$0]  %s57_s23, 32, %s59_s24, [#allocation6], %s606_s27, %s606_s27, %s607_s28  }
   0xe   :  { %s608_s29 = smov [#allocation8]  }
   0xf   :  { %s71_s30 = sshll.u32 %s608_s29, 4  ;;  %s72_s30 = int_to_ptr.vmem [resolvable:$true] %s71_s30 }
  0x10   :  { %77 = dma.hbm_to_vmem [thread:$0]  %s70_s1, 32, %s72_s30, [#allocation9], %s606_s27, %s606_s27, %s607_s28  }
  0x11   :  { %591 = dma.done.wait [#allocation3], 768  }
  0x12   :  { %592 = vsyncadd [#allocation3], 4294966528 }
  0x13   :  { %593 = dma.done.wait [#allocation6], 544  }
  0x14   :  { %594 = vsyncadd [#allocation6], 4294966752 }
  0x15   :  { %595 = dma.done.wait [#allocation9], 32  }
  0x16   :  { %596 = vsyncadd [#allocation9], 4294967264  ;;  %v106_v0 = vld [vmem:[#allocation2 + $0x28] sm:$0xff]  ;;  %v105_v1 = vld [vmem:[#allocation2 + $0x20] sm:$0xff]  ;;  %vm111_vm0 = vcmask 261120   ;;  %vm135_vm1 = vcmask 392192  }
  0x17   :  { %v110_v2 = vld [vmem:[%s752_s3 + $0x18] sm:$0xff]  ;;  %149 = vmatpush.msra.mxu1 %v106_v0  ;;  %v109_v3 = vld [vmem:[%s752_s3 + $0x10] sm:$0xff]  ;;  %v108_v5 = vld [vmem:[%s752_s3 + $0x8] sm:$0xff]  ;;  %s609_s20 = smov 64   ;;  %s610_s21 = smov 32   ;;  %vm309_vm6 = vcmask 253952  }
  0x18   :  { %127 = vmatpush.msra.mxu0 %v110_v2  ;;  %v104_v4 = vld [vmem:[#allocation2 + $0x18] sm:$0xff]  ;;  %v103_v6 = vld [vmem:[#allocation2 + $0x10] sm:$0xff]  ;;  %v107_v7 = vld [vmem:[%s752_s3] sm:$0xff]  ;;  %s612_s30 = smov [#allocation10]   ;;  %s333_s11 = sshll.u32 %s756_s7, 4  ;;  %s334_s11 = int_to_ptr.hbm [resolvable:$true] %s333_s11 }
  0x19   :  { %150 = vmatpush.msra.mxu1 %v105_v1  ;;  %v94_v8 = vld [vmem:[#allocation7] sm:$0x1]  ;;  %v102_v9 = vld [vmem:[#allocation2 + $0x8] sm:$0xff]  ;;  %v101_v10 = vld [vmem:[#allocation2] sm:$0xff]  ;;  %s331_s5 = sshll.u32 %s612_s30, 4  ;;  %s613_s12 = smov [#allocation11]   ;;  %s332_s5 = int_to_ptr.vmem [resolvable:$true] %s331_s5 }
  0x1a   :  { %128 = vmatpush.msra.mxu0 %v109_v3  ;;  %v100_v11 = vld [vmem:[%s749_s0] sm:$0x1]  ;;  %v405_v18 = vld [vmem:[#allocation8] ss:$0 sm:$0xff]  ;;  %v386_v39 = vld [vmem:[%s752_s3 + $0x38] sm:$0xff]  ;;  %s341_s13 = sshll.u32 %s613_s12, 4  ;;  %s342_s13 = int_to_ptr.vmem [resolvable:$true] %s341_s13 }
  0x1b   :  { %151 = vmatpush.msra.mxu1 %v104_v4  ;;  %v159_v14 = vld [vmem:[%s753_s4] sm:$0x1]  ;;  %v206_v40 = vld [vmem:[#allocation5 + $0x18] sm:$0xff]  ;;  %v385_v41 = vld [vmem:[%s752_s3 + $0x30] sm:$0xff]  ;;  %227 = vmatpush.msra.mxu2 %v386_v39  ;;  %s343_s16 = sshll.u32 %s757_s8, 4  ;;  %s614_s17 = smov [#allocation13]   ;;  %s344_s16 = int_to_ptr.hbm [resolvable:$true] %s343_s16 }
  0x1c   :  { %129 = vmatpush.msra.mxu0 %v108_v5  ;;  %252 = vmatpush.msra.mxu3 %v206_v40  ;;  %v205_v42 = vld [vmem:[#allocation5 + $0x10] sm:$0xff]  ;;  %v384_v43 = vld [vmem:[%s752_s3 + $0x28] sm:$0xff]  ;;  %v204_v44 = vld [vmem:[#allocation5 + $0x8] sm:$0xff]  ;;  %s354_s18 = sshll.u32 %s614_s17, 4  ;;  %s355_s18 = int_to_ptr.vmem [resolvable:$true] %s354_s18 }
  0x1d   :  { %152 = vmatpush.msra.mxu1 %v103_v6  ;;  %228 = vmatpush.msra.mxu2 %v385_v41  ;;  %v383_v45 = vld [vmem:[%s752_s3 + $0x20] sm:$0xff]  ;;  %v203_v46 = vld [vmem:[#allocation5] sm:$0xff] }
  0x1e   :  { %130 = vmatpush.msra.mxu0 %v107_v7  ;;  %253 = vmatpush.msra.mxu3 %v205_v42  ;;  %v96_v49 = vld [vmem:[#allocation7 + $0x1] sm:$0x1]  ;;  %v406_v50 = vld [vmem:[#allocation8 + $0x1] ss:$0 sm:$0xff]  ;;  %v389_v54 = vld [vmem:[%s753_s4 + $0x1] sm:$0x1] }
  0x1f   :  { %380 = vmatmul.msk.f32.vlgmr.msra.gmra.mxu0 %vm111_vm0, %v94_v8  ;;  %153 = vmatpush.msra.mxu1 %v102_v9  ;;  %s611_s4 = smov 96  }
  0x20   :  { %229 = vmatpush.msra.mxu2 %v384_v43  ;;  %254 = vmatpush.msra.mxu3 %v204_v44 }
  0x21   :  { %154 = vmatpush.msra.mxu1 %v101_v10 }
  0x22   :  { %381 = vmatmul.msk.f32.vlgmr.msra.gmra.mxu1 %vm135_vm1, %v100_v11  ;;  %230 = vmatpush.msra.mxu2 %v383_v45 }
  0x23   :  { %255 = vmatpush.msra.mxu3 %v203_v46  ;;  %387 = vmatmul.msk.f32.vlgmr.msra.gmra.mxu2 %vm111_vm0, %v96_v49 }
  0x9c   :  { %v132_v12 = vpop.f32.mrf.mxu0 }
  0x9f   :  { %v156_v13 = vpop.f32.mrf.mxu1 }
  0xa0   :  { %v157_v15 = vadd.f32 %v156_v13, %v132_v12 }
  0xa2   :  { %v160_v16 = vadd.f32 %v159_v14, %v157_v15 }
  0xa4   :  { %407 = vtanh.f32 %v160_v16  ;;  %v382_v19 = vmul.f32 -1.442695, %v160_v16 }
  0xa6   :  { %409 = vpow2.f32 %v382_v19  ;;  %v232_v52 = vpop.f32.mrf.mxu2 }
  0xaa   :  { %v408_v17 = vpop.eup %407 }
  0xab   :  { %188 = vrot.lane.b32.xlu0 %v408_v17, %s609_s20 }
  0xac   :  { %v410_v20 = vpop.eup %409 }
  0xad   :  { %v164_v21 = vadd.f32 1.0, %v410_v20 }
  0xaf   :  { %411 = vrcp.f32 %v164_v21  ;;  %v176_v27 = vand.u32 2147483648, %v164_v21  ;;  %vm170_vm3 = vweird.f32 %v164_v21  ;;  %v174_v28 = vand.u32 2147483647, %v164_v21 }
  0xb1   :  { %v177_v30 = vor.u32 1.1754944e-38, %v176_v27  ;;  %vm175_vm5 = vcmp.eq.f32.partialorder %v174_v28, 8.507059e+37 }
  0xb3   :  { %183 = vrot.lane.b32.xlu0 %v405_v18, %s610_s21 }
  0xb5   :  { %v412_v22 = vpop.eup %411 }
  0xb6   :  { %v166_v23 = vmul.f32 %v412_v22, %v164_v21  ;;  %vm171_vm2 = vweird.f32 %v412_v22 }
  0xb7   :  { %vm172_vm4 = vmor %vm170_vm3, %vm171_vm2 }
  0xb8   :  { %v167_v24 = vsub.f32 1.0, %v166_v23 }
  0xba   :  { %v168_v25 = vmul.f32 %v412_v22, %v167_v24 }
  0xbb   :  { %285 = vrot.lane.b32.xlu0 %v406_v50, %s610_s21 }
  0xbc   :  { %v169_v26 = vadd.f32 %v412_v22, %v168_v25 }
  0xbe   :  { %v173_v29 = vsel %vm172_vm4, %v412_v22, %v169_v26 }
  0xbf   :  { %v178_v32 = vsel %vm175_vm5, %v177_v30, %v173_v29 }
 0x11d   :  { %v189_v31 = vpop.permute.xlu0 %188 }
 0x11e   :  { %v191_v33 = vmul.f32 %v189_v31, %v178_v32 }
 0x120   :  { %193 = vrot.lane.b32.xlu1 %v191_v33, %s610_s21 }
 0x125   :  { %v184_v34 = vpop.permute.xlu0 %183 }
 0x126   :  { %v186_v35 = vmul.f32 %v184_v34, %v178_v32 }
 0x12d   :  { %v286_v9 = vpop.permute.xlu0 %285 }
 0x192   :  { %v194_v36 = vpop.permute.xlu1 %193 }
 0x193   :  { %v196_v37 = vadd.f32 %v194_v36, %v186_v35 }
 0x195   :  { %413 = vtanh.f32 %v196_v37 }
 0x19b   :  { %v414_v38 = vpop.eup %413 }
 0x19c   :  { %199 = vrot.lane.b32.xlu1 %v414_v38, %s609_s20 }
 0x20e   :  { %v200_v47 = vpop.permute.xlu1 %199 }
 0x20f   :  { %v202_v48 = vmul.f32 %v200_v47, %v178_v32 }
 0x211   :  { %236 = vrot.lane.b32.xlu2 %v202_v48, %s610_s21 }
 0x26b   :  { %v237_v51 = vpop.permute.xlu2 %236 }
 0x26c   :  { %312 = vst.msk [vmem:[#allocation11] sm:$0x1] %vm309_vm6, %v237_v51  ;;  %388 = vmatmul.msk.f32.vlgmr.msra.gmra.mxu3 %vm111_vm0, %v237_v51 }
 0x2ef   :  { %v257_v53 = vpop.f32.mrf.mxu3 }
 0x2f0   :  { %v258_v55 = vadd.f32 %v257_v53, %v232_v52 }
 0x2f2   :  { %v262_v56 = vadd.f32 %v389_v54, %v258_v55 }
 0x2f4   :  { %415 = vtanh.f32 %v262_v56  ;;  %v390_v58 = vmul.f32 -1.442695, %v262_v56 }
 0x2f6   :  { %417 = vpow2.f32 %v390_v58 }
 0x2fa   :  { %v416_v57 = vpop.eup %415 }
 0x2fb   :  { %290 = vrot.lane.b32.xlu2 %v416_v57, %s609_s20 }
 0x2fc   :  { %v418_v59 = vpop.eup %417 }
 0x2fd   :  { %v266_v60 = vadd.f32 1.0, %v418_v59 }
 0x2ff   :  { %419 = vrcp.f32 %v266_v60  ;;  %v278_v2 = vand.u32 2147483648, %v266_v60  ;;  %vm272_vm8 = vweird.f32 %v266_v60  ;;  %v276_v3 = vand.u32 2147483647, %v266_v60 }
 0x301   :  { %v279_v5 = vor.u32 1.1754944e-38, %v278_v2  ;;  %vm277_vm10 = vcmp.eq.f32.partialorder %v276_v3, 8.507059e+37 }
 0x305   :  { %v420_v61 = vpop.eup %419 }
 0x306   :  { %v268_v62 = vmul.f32 %v420_v61, %v266_v60  ;;  %vm273_vm7 = vweird.f32 %v420_v61 }
 0x307   :  { %vm274_vm9 = vmor %vm272_vm8, %vm273_vm7 }
 0x308   :  { %v269_v63 = vsub.f32 1.0, %v268_v62 }
 0x30a   :  { %v270_v0 = vmul.f32 %v420_v61, %v269_v63 }
 0x30c   :  { %v271_v1 = vadd.f32 %v420_v61, %v270_v0 }
 0x30e   :  { %v275_v4 = vsel %vm274_vm9, %v420_v61, %v271_v1 }
 0x30f   :  { %v280_v6 = vsel %vm277_vm10, %v279_v5, %v275_v4 }
 0x310   :  { %v288_v10 = vmul.f32 %v286_v9, %v280_v6 }
 0x355   :  { %v291_v7 = vpop.permute.xlu2 %290 }
 0x356   :  { %v293_v8 = vmul.f32 %v291_v7, %v280_v6 }
 0x358   :  { %295 = vrot.lane.b32.xlu1 %v293_v8, %s610_s21 }
 0x360   :  { %314 = vrot.lane.b32.xlu1 %v196_v37, %s611_s4 }
 0x3ca   :  { %v296_v11 = vpop.permute.xlu1 %295 }
 0x3cb   :  { %v298_v12 = vadd.f32 %v296_v11, %v288_v10 }
 0x3cd   :  { %421 = vtanh.f32 %v298_v12 }
 0x3d2   :  { %v315_v13 = vpop.permute.xlu1 %314 }
 0x3d3   :  { %v422_v14 = vpop.eup %421  ;;  %317 = vst.msk [vmem:[#allocation13] sm:$0x1] %vm309_vm6, %v315_v13 }
 0x3d4   :  { %301 = vrot.lane.b32.xlu2 %v422_v14, %s609_s20 }
 0x3dc   :  { %321 = vrot.lane.b32.xlu2 %v298_v12, %s611_s4 }
 0x42e   :  { %v302_v15 = vpop.permute.xlu2 %301 }
 0x42f   :  { %v304_v16 = vmul.f32 %v302_v15, %v280_v6 }
 0x431   :  { %306 = vrot.lane.b32.xlu0 %v304_v16, %s610_s21  ;;  %s356_s21 = sshll.u32 %s758_s9, 4  ;;  %s357_s21 = int_to_ptr.hbm [resolvable:$true] %s356_s21 }
 0x436   :  { %v322_v17 = vpop.permute.xlu2 %321 }
 0x437   :  { %325 = vst.msk [vmem:[#allocation13 + $0x1] sm:$0x1] %vm309_vm6, %v322_v17 }
 0x4a3   :  { %v307_v18 = vpop.permute.xlu0 %306 }
 0x4a4   :  { %310 = vst.msk [vmem:[#allocation10] sm:$0x1] %vm309_vm6, %v307_v18 }
 0x4a5   :  { %319 = vst.msk [vmem:[#allocation11 + $0x1] sm:$0x1] %vm309_vm6, %v307_v18  ;;  %336 = dma.vmem_to_hbm [thread:$0]  %s332_s5, 16, %s334_s11, [#allocation4]  }
 0x4a6   :  { %349 = dma.vmem_to_hbm [thread:$0]  %s342_s13, 32, %s344_s16, [#allocation12], %s606_s27, %s606_s27, %s607_s28  }
 0x4a7   :  { %362 = dma.vmem_to_hbm [thread:$0]  %s355_s18, 32, %s357_s21, [#allocation12], %s606_s27, %s606_s27, %s607_s28  }
 0x4a8   :  { %597 = dma.done.wait [#allocation4], 16  }
 0x4a9   :  { %598 = vsyncadd [#allocation4], 4294967280 }
 0x4aa   :  { %599 = dma.done.wait [#allocation12], 64  }
 0x4ab   :  { %600 = vsyncadd [#allocation12], 4294967232 }
 0x4ac   :  { %375 = vsyncpa [#allocation3], 1 }
 0x4ad   :  { %376 = vsyncpa [#allocation6], 1 }
 0x4ae   :  { %377 = vsyncpa [#allocation9], 1 }
 0x4af   :  { %378 = vsyncpa [#allocation4], 1 }
 0x4b0   :  { %379 = vsyncpa [#allocation12], 1 }

</bundles_post_ra>
